<compile_context>
chip_gen: v7x
topology: tpu7x:2x2x1
jax: 0.10.0
libtpu: 0.0.40
codegen_flags: <defaults>
</compile_context>

<pallas_src>
import jax
import jax.numpy as jnp
from jax.experimental import pallas as pl
from jax.experimental.pallas import tpu as pltpu

LANE = 128
SUBLANE = 8
MAX_TILE_ROWS = 2048   # per-grid-step batch tile; well under VMEM limits on v5e/v6e/v7x


def _round_up(n, m):
    return ((n + m - 1) // m) * m


def _cdiv(a, b):
    return -(-a // b)


# ----------------------------------------------------------------------------- kernel
def _mlp_kernel(x_ref, w1_ref, w2_ref, w3_ref, b_ref, out_ref):
    """Shared trunk: fc1+relu -> fc2+relu -> fc3 (raw). Single lane-dense output slab."""
    h1p = w1_ref.shape[1]
    h2p = w2_ref.shape[1]
    w1 = w1_ref[...]
    w2 = w2_ref[...]
    w3 = w3_ref[...]
    mx_dtype = w1.dtype  # f32 (exact) or bf16 (v6e/v7x MXU-native); accumulate in f32.

    # fc1 + relu   (dropout == identity in eval mode)
    # TODO(synk): training-mode dropout (scaled Bernoulli mask via pltpu.prng_seed /
    # pltpu.prng_random_bits) not emitted; forward matches the PyTorch module in eval().
    x = x_ref[...]
    h1 = jnp.dot(x.astype(mx_dtype), w1, preferred_element_type=jnp.float32)
    h1 = jnp.maximum(h1 + b_ref[:, 0:h1p], 0.0)

    # fc2 + relu
    h2 = jnp.dot(h1.astype(mx_dtype), w2, preferred_element_type=jnp.float32)
    h2 = jnp.maximum(h2 + b_ref[:, h1p:h1p + h2p], 0.0)

    # fc3 -> raw pre-activation (actor tanh is applied on the tiny sliced result in XLA)
    h3 = jnp.dot(h2.astype(mx_dtype), w3, preferred_element_type=jnp.float32)
    out_ref[...] = (h3 + b_ref[:, h1p + h2p:]).astype(out_ref.dtype)


# ----------------------------------------------------------------------------- wrapper
def _trunk_forward(x, padded_params, *, max_tile_rows=MAX_TILE_ROWS):
    """Returns the raw, padded fc3 slab [padded_b, out_pad] (f32) from one launch."""
    batch, in_dim = x.shape
    w1, w2, w3, b = (padded_params[k] for k in ("w1", "w2", "w3", "b"))
    out_pad = w3.shape[1]

    # Grid: fewest possible steps (1 for small/medium batches); an EVEN number of
    # steps for big batches so both TensorCores can be used on v7x. Batch is padded
    # only to a multiple of 8 sublanes per step -> negligible wasted rows.
    rows8 = _round_up(max(batch, SUBLANE), SUBLANE)
    if rows8 <= max_tile_rows:
        num_steps = 1
    else:
        num_steps = 2 * _cdiv(rows8, 2 * max_tile_rows)
    tile_b = _round_up(_cdiv(rows8, num_steps), SUBLANE)
    padded_b = tile_b * num_steps
    if padded_b != batch:
        x = jnp.pad(x, ((0, padded_b - batch), (0, 0)))

    h1p, h2p = w1.shape[1], w2.shape[1]
    flops = 2 * padded_b * (in_dim * h1p + h1p * h2p + h2p * out_pad)
    bytes_accessed = (sum(int(a.size) * a.dtype.itemsize for a in (x, w1, w2, w3, b))
                      + 4 * padded_b * out_pad)
    cost = pl.CostEstimate(flops=flops, transcendentals=0, bytes_accessed=bytes_accessed)

    def call(single_buffer_resident):
        kw = {"pipeline_mode": pl.Buffered(1)} if single_buffer_resident else {}
        # Whole-array, grid-invariant blocks: stay VMEM-resident across grid steps.
        resident = lambda a: pl.BlockSpec(a.shape, lambda i: (0, 0), **kw)
        return pl.pallas_call(
            _mlp_kernel,
            out_shape=jax.ShapeDtypeStruct((padded_b, out_pad), jnp.float32),
            grid_spec=pltpu.PrefetchScalarGridSpec(
                num_scalar_prefetch=0,
                grid=(num_steps,),
                in_specs=[pl.BlockSpec((tile_b, in_dim), lambda i: (i, 0)),
                          resident(w1), resident(w2), resident(w3), resident(b)],
                out_specs=pl.BlockSpec((tile_b, out_pad), lambda i: (i, 0))),
            compiler_params=pltpu.CompilerParams(
                dimension_semantics=(pltpu.PARALLEL,)),
            cost_estimate=cost,
        )(x, w1, w2, w3, b)

    try:
        return call(True)        # weights/bias single-buffered (they never change)
    except Exception:            # pl.Buffered(1) unsupported on this jax build
        return call(False)


def network_forward_fused(x, padded_params, out_dim, *, max_tile_rows=MAX_TILE_ROWS):
    """One launch -> (actor actions in [-1,1], critic Q values), each [batch, out_dim]."""
    h3_pad = _trunk_forward(x, padded_params, max_tile_rows=max_tile_rows)
    h3 = h3_pad[:x.shape[0], :out_dim]
    return jnp.tanh(h3), h3


def network_forward(x, padded_params, out_dim, *, actor, max_tile_rows=MAX_TILE_ROWS):
    """Module-faithful single-head forward (no unused-head writeback; tanh is a
    trivially-fused XLA op over the tiny (batch, out_dim) result when actor=True)."""
    h3_pad = _trunk_forward(x, padded_params, max_tile_rows=max_tile_rows)
    h3 = h3_pad[:x.shape[0], :out_dim]
    return jnp.tanh(h3) if actor else h3


# ----------------------------------------------------------------------------- params
def init_params(key, input_dim, hidden_in_dim, hidden_out_dim, output_dim):
    """torch.nn.Linear default init: U(-1/sqrt(fan_in), 1/sqrt(fan_in))."""
    keys = jax.random.split(key, 6)

    def linear(kw, kb, fan_in, fan_out):
        bound = float(fan_in) ** -0.5
        w = jax.random.uniform(kw, (fan_in, fan_out), jnp.float32, -bound, bound)
        b = jax.random.uniform(kb, (1, fan_out), jnp.float32, -bound, bound)
        return w, b

    w1, b1 = linear(keys[0], keys[1], input_dim, hidden_in_dim)
    w2, b2 = linear(keys[2], keys[3], hidden_in_dim, hidden_out_dim)
    w3, b3 = linear(keys[4], keys[5], hidden_out_dim, output_dim)
    return {"w1": w1, "b1": b1, "w2": w2, "b2": b2, "w3": w3, "b3": b3}


def pad_params(params, lane=LANE, matmul_dtype=jnp.float32):
    """Zero-pad hidden/output dims to 128 lanes (exact: padded units contribute 0),
    concatenate biases into one row (fewer DMA streams), optionally store weights
    in bf16 for v6e/v7x MXU-native matmuls (biases stay f32)."""
    in_dim, h1 = params["w1"].shape
    h2 = params["w2"].shape[1]
    out = params["w3"].shape[1]
    h1p, h2p, outp = (_round_up(d, lane) for d in (h1, h2, out))

    def pad2(a, rows, cols):
        return jnp.pad(a, ((0, rows - a.shape[0]), (0, cols - a.shape[1])))

    w1 = pad2(params["w1"], in_dim, h1p).astype(matmul_dtype)
    w2 = pad2(params["w2"], h1p, h2p).astype(matmul_dtype)
    w3 = pad2(params["w3"], h2p, outp).astype(matmul_dtype)
    b = jnp.concatenate([pad2(params["b1"], 1, h1p),
                         pad2(params["b2"], 1, h2p),
                         pad2(params["b3"], 1, outp)], axis=1).astype(jnp.float32)
    return {"w1": w1, "w2": w2, "w3": w3, "b": b}


def reference_forward(x, p, *, actor):
    h1 = jnp.maximum(x @ p["w1"] + p["b1"], 0.0)
    h2 = jnp.maximum(h1 @ p["w2"] + p["b2"], 0.0)
    h3 = h2 @ p["w3"] + p["b3"]
    return jnp.tanh(h3) if actor else h3


# ----------------------------------------------------------------------------- demo / check
if __name__ == "__main__":
    # Shapes consistent with Network(input_dim=24, hidden_in_dim=64, hidden_out_dim=32,
    #                                output_dim=2, dropout=0.1, actor=True/False)
    input_dim, hidden_in, hidden_out, output_dim = 24, 64, 32, 2

    key = jax.random.PRNGKey(0)
    k_params, k_x1, k_x2 = jax.random.split(key, 3)
    params = init_params(k_params, input_dim, hidden_in, hidden_out, output_dim)
    padded_f32 = pad_params(params)                                # exact f32 matmuls
    padded_bf16 = pad_params(params, matmul_dtype=jnp.bfloat16)    # v6e/v7x MXU-native

    # Case 1: small batch -> single grid step, both heads from ONE launch.
    x_small = jax.random.normal(k_x1, (8, input_dim), jnp.float32)
    actor_out, critic_out = jax.block_until_ready(
        network_forward_fused(x_small, padded_f32, output_dim))
    ref_a = reference_forward(x_small, params, actor=True)
    ref_c = reference_forward(x_small, params, actor=False)
    assert actor_out.shape == (8, output_dim) and critic_out.shape == (8, output_dim)
    assert jnp.allclose(actor_out, ref_a, atol=1e-5, rtol=1e-4)
    assert jnp.allclose(critic_out, ref_c, atol=1e-5, rtol=1e-4)

    # Case 2: awkward batch (not a tile multiple), forced multi-step EVEN grid
    # (weights stay VMEM-resident across steps; x / the single output slab stream).
    x_big = jax.random.normal(k_x2, (203, input_dim), jnp.float32)
    a_big, c_big = jax.block_until_ready(
        network_forward_fused(x_big, padded_f32, output_dim, max_tile_rows=64))
    assert jnp.allclose(a_big, reference_forward(x_big, params, actor=True),
                        atol=1e-5, rtol=1e-4)
    assert jnp.allclose(c_big, reference_forward(x_big, params, actor=False),
                        atol=1e-5, rtol=1e-4)

    # Single-head API parity with Network(actor=True/False).forward
    a_only = jax.block_until_ready(
        network_forward(x_small, padded_f32, output_dim, actor=True))
    c_only = jax.block_until_ready(
        network_forward(x_small, padded_f32, output_dim, actor=False))
    assert jnp.array_equal(a_only, actor_out) and jnp.array_equal(c_only, critic_out)

    # bf16 MXU operands (f32 accumulate / elementwise) -> looser tolerance by design.
    a_bf, c_bf = jax.block_until_ready(
        network_forward_fused(x_small, padded_bf16, output_dim))
    assert jnp.allclose(a_bf, ref_a, atol=3e-2, rtol=3e-2)
    assert jnp.allclose(c_bf, ref_c, atol=3e-2, rtol=3e-2)

    print("KERNEL_OK")
</pallas_src>

<mosaic_0001>
module attributes {stable_mosaic.version = 11 : i64} {
  func.func @_mlp_kernel(%arg0: i32, %arg1: memref<8x24xf32, #tpu.memory_space<vmem>>, %arg2: memref<24x128xf32, #tpu.memory_space<vmem>>, %arg3: memref<128x128xf32, #tpu.memory_space<vmem>>, %arg4: memref<128x128xf32, #tpu.memory_space<vmem>>, %arg5: memref<1x384xf32, #tpu.memory_space<vmem>>, %arg6: memref<8x128xf32, #tpu.memory_space<vmem>>) attributes {dimension_semantics = [#tpu.dimension_semantics<parallel>], iteration_bounds = array<i64: 1>, scalar_prefetch = 0 : i64, scratch_operands = 0 : i64, tpu.core_type = #tpu.core_type<tc>, window_params = [{transform_indices = @transform_0, window_bounds = array<i64: 8, 24>}, {pipeline_mode = #tpu.pipeline_mode<synchronous>, transform_indices = @transform_1, window_bounds = array<i64: 24, 128>}, {pipeline_mode = #tpu.pipeline_mode<synchronous>, transform_indices = @transform_2, window_bounds = array<i64: 128, 128>}, {pipeline_mode = #tpu.pipeline_mode<synchronous>, transform_indices = @transform_3, window_bounds = array<i64: 128, 128>}, {pipeline_mode = #tpu.pipeline_mode<synchronous>, transform_indices = @transform_4, window_bounds = array<i64: 1, 384>}, {transform_indices = @transform_5, window_bounds = array<i64: 8, 128>}]} {
    %c0 = arith.constant 0 : index
    %c0_0 = arith.constant 0 : index
    %0 = vector.load %arg2[%c0, %c0_0] : memref<24x128xf32, #tpu.memory_space<vmem>>, vector<24x128xf32>
    %c0_1 = arith.constant 0 : index
    %c0_2 = arith.constant 0 : index
    %1 = vector.load %arg3[%c0_1, %c0_2] : memref<128x128xf32, #tpu.memory_space<vmem>>, vector<128x128xf32>
    %c0_3 = arith.constant 0 : index
    %c0_4 = arith.constant 0 : index
    %2 = vector.load %arg4[%c0_3, %c0_4] : memref<128x128xf32, #tpu.memory_space<vmem>>, vector<128x128xf32>
    %c0_5 = arith.constant 0 : index
    %c0_6 = arith.constant 0 : index
    %3 = vector.load %arg1[%c0_5, %c0_6] : memref<8x24xf32, #tpu.memory_space<vmem>>, vector<8x24xf32>
    %cst = arith.constant dense<0.000000e+00> : vector<8x128xf32>
    %4 = tpu.matmul %3, %0, %cst {dimension_numbers = #tpu.dot_dimension_numbers<[1], [0], [0], [1], [0, 0, 1, 1], [], []>} : vector<8x24xf32>, vector<24x128xf32>, vector<8x128xf32> -> vector<8x128xf32>
    %c0_7 = arith.constant 0 : index
    %c0_8 = arith.constant 0 : index
    %5 = vector.load %arg5[%c0_7, %c0_8] : memref<1x384xf32, #tpu.memory_space<vmem>>, vector<1x128xf32>
    %6 = vector.broadcast %5 : vector<1x128xf32> to vector<8x128xf32>
    %7 = arith.addf %4, %6 : vector<8x128xf32>
    %cst_9 = arith.constant 0.000000e+00 : f32
    %8 = vector.broadcast %cst_9 : f32 to vector<8x128xf32>
    %9 = arith.maximumf %7, %8 : vector<8x128xf32>
    %cst_10 = arith.constant dense<0.000000e+00> : vector<8x128xf32>
    %10 = tpu.matmul %9, %1, %cst_10 {dimension_numbers = #tpu.dot_dimension_numbers<[1], [0], [0], [1], [0, 0, 1, 1], [], []>} : vector<8x128xf32>, vector<128x128xf32>, vector<8x128xf32> -> vector<8x128xf32>
    %c0_11 = arith.constant 0 : index
    %c128 = arith.constant 128 : index
    %11 = vector.load %arg5[%c0_11, %c128] : memref<1x384xf32, #tpu.memory_space<vmem>>, vector<1x128xf32>
    %12 = vector.broadcast %11 : vector<1x128xf32> to vector<8x128xf32>
    %13 = arith.addf %10, %12 : vector<8x128xf32>
    %cst_12 = arith.constant 0.000000e+00 : f32
    %14 = vector.broadcast %cst_12 : f32 to vector<8x128xf32>
    %15 = arith.maximumf %13, %14 : vector<8x128xf32>
    %cst_13 = arith.constant dense<0.000000e+00> : vector<8x128xf32>
    %16 = tpu.matmul %15, %2, %cst_13 {dimension_numbers = #tpu.dot_dimension_numbers<[1], [0], [0], [1], [0, 0, 1, 1], [], []>} : vector<8x128xf32>, vector<128x128xf32>, vector<8x128xf32> -> vector<8x128xf32>
    %c0_14 = arith.constant 0 : index
    %c256 = arith.constant 256 : index
    %17 = vector.load %arg5[%c0_14, %c256] : memref<1x384xf32, #tpu.memory_space<vmem>>, vector<1x128xf32>
    %18 = vector.broadcast %17 : vector<1x128xf32> to vector<8x128xf32>
    %19 = arith.addf %16, %18 : vector<8x128xf32>
    %c0_15 = arith.constant 0 : index
    %c0_16 = arith.constant 0 : index
    %20 = vector.load %arg6[%c0_15, %c0_16] : memref<8x128xf32, #tpu.memory_space<vmem>>, vector<8x128xf32>
    tpu.vector_store %arg6[%c0_15, %c0_16], %19 {strides = array<i32>} : memref<8x128xf32, #tpu.memory_space<vmem>>, vector<8x128xf32>,
    return
  }
  func.func @transform_0(%arg0: i32) -> (i32, i32) {
    %c0_i32 = arith.constant 0 : i32
    %c0_i32_0 = arith.constant 0 : i32
    return %arg0, %c0_i32 : i32, i32
  }
  func.func @transform_1(%arg0: i32) -> (i32, i32) {
    %c0_i32 = arith.constant 0 : i32
    %c0_i32_0 = arith.constant 0 : i32
    %c0_i32_1 = arith.constant 0 : i32
    return %c0_i32, %c0_i32_0 : i32, i32
  }
  func.func @transform_2(%arg0: i32) -> (i32, i32) {
    %c0_i32 = arith.constant 0 : i32
    %c0_i32_0 = arith.constant 0 : i32
    %c0_i32_1 = arith.constant 0 : i32
    return %c0_i32, %c0_i32_0 : i32, i32
  }
  func.func @transform_3(%arg0: i32) -> (i32, i32) {
    %c0_i32 = arith.constant 0 : i32
    %c0_i32_0 = arith.constant 0 : i32
    %c0_i32_1 = arith.constant 0 : i32
    return %c0_i32, %c0_i32_0 : i32, i32
  }
  func.func @transform_4(%arg0: i32) -> (i32, i32) {
    %c0_i32 = arith.constant 0 : i32
    %c0_i32_0 = arith.constant 0 : i32
    %c0_i32_1 = arith.constant 0 : i32
    return %c0_i32, %c0_i32_0 : i32, i32
  }
  func.func @transform_5(%arg0: i32) -> (i32, i32) {
    %c0_i32 = arith.constant 0 : i32
    %c0_i32_0 = arith.constant 0 : i32
    return %arg0, %c0_i32 : i32, i32
  }
}

module attributes {stable_mosaic.version = 11 : i64} {
  func.func @_mlp_kernel(%arg0: i32, %arg1: memref<8x24xf32, #tpu.memory_space<vmem>>, %arg2: memref<24x128xf32, #tpu.memory_space<vmem>>, %arg3: memref<128x128xf32, #tpu.memory_space<vmem>>, %arg4: memref<128x128xf32, #tpu.memory_space<vmem>>, %arg5: memref<1x384xf32, #tpu.memory_space<vmem>>, %arg6: memref<8x128xf32, #tpu.memory_space<vmem>>) attributes {dimension_semantics = [#tpu.dimension_semantics<parallel>], iteration_bounds = array<i64: 1>, scalar_prefetch = 0 : i64, scratch_operands = 0 : i64, tpu.core_type = #tpu.core_type<tc>, window_params = [{transform_indices = @transform_0, window_bounds = array<i64: 8, 24>}, {pipeline_mode = #tpu.pipeline_mode<synchronous>, transform_indices = @transform_1, window_bounds = array<i64: 24, 128>}, {pipeline_mode = #tpu.pipeline_mode<synchronous>, transform_indices = @transform_2, window_bounds = array<i64: 128, 128>}, {pipeline_mode = #tpu.pipeline_mode<synchronous>, transform_indices = @transform_3, window_bounds = array<i64: 128, 128>}, {pipeline_mode = #tpu.pipeline_mode<synchronous>, transform_indices = @transform_4, window_bounds = array<i64: 1, 384>}, {transform_indices = @transform_5, window_bounds = array<i64: 8, 128>}]} {
    %c0 = arith.constant 0 : index
    %c0_0 = arith.constant 0 : index
    %0 = vector.load %arg2[%c0, %c0_0] : memref<24x128xf32, #tpu.memory_space<vmem>>, vector<24x128xf32>
    %c0_1 = arith.constant 0 : index
    %c0_2 = arith.constant 0 : index
    %1 = vector.load %arg3[%c0_1, %c0_2] : memref<128x128xf32, #tpu.memory_space<vmem>>, vector<128x128xf32>
    %c0_3 = arith.constant 0 : index
    %c0_4 = arith.constant 0 : index
    %2 = vector.load %arg4[%c0_3, %c0_4] : memref<128x128xf32, #tpu.memory_space<vmem>>, vector<128x128xf32>
    %c0_5 = arith.constant 0 : index
    %c0_6 = arith.constant 0 : index
    %3 = vector.load %arg1[%c0_5, %c0_6] : memref<8x24xf32, #tpu.memory_space<vmem>>, vector<8x24xf32>
    %cst = arith.constant dense<0.000000e+00> : vector<8x128xf32>
    %4 = tpu.matmul %3, %0, %cst {dimension_numbers = #tpu.dot_dimension_numbers<[1], [0], [0], [1], [0, 0, 1, 1], [], []>} : vector<8x24xf32>, vector<24x128xf32>, vector<8x128xf32> -> vector<8x128xf32>
    %c0_7 = arith.constant 0 : index
    %c0_8 = arith.constant 0 : index
    %5 = vector.load %arg5[%c0_7, %c0_8] : memref<1x384xf32, #tpu.memory_space<vmem>>, vector<1x128xf32>
    %6 = vector.broadcast %5 : vector<1x128xf32> to vector<8x128xf32>
    %7 = arith.addf %4, %6 : vector<8x128xf32>
    %cst_9 = arith.constant 0.000000e+00 : f32
    %8 = vector.broadcast %cst_9 : f32 to vector<8x128xf32>
    %9 = arith.maximumf %7, %8 : vector<8x128xf32>
    %cst_10 = arith.constant dense<0.000000e+00> : vector<8x128xf32>
    %10 = tpu.matmul %9, %1, %cst_10 {dimension_numbers = #tpu.dot_dimension_numbers<[1], [0], [0], [1], [0, 0, 1, 1], [], []>} : vector<8x128xf32>, vector<128x128xf32>, vector<8x128xf32> -> vector<8x128xf32>
    %c0_11 = arith.constant 0 : index
    %c128 = arith.constant 128 : index
    %11 = vector.load %arg5[%c0_11, %c128] : memref<1x384xf32, #tpu.memory_space<vmem>>, vector<1x128xf32>
    %12 = vector.broadcast %11 : vector<1x128xf32> to vector<8x128xf32>
    %13 = arith.addf %10, %12 : vector<8x128xf32>
    %cst_12 = arith.constant 0.000000e+00 : f32
    %14 = vector.broadcast %cst_12 : f32 to vector<8x128xf32>
    %15 = arith.maximumf %13, %14 : vector<8x128xf32>
    %cst_13 = arith.constant dense<0.000000e+00> : vector<8x128xf32>
    %16 = tpu.matmul %15, %2, %cst_13 {dimension_numbers = #tpu.dot_dimension_numbers<[1], [0], [0], [1], [0, 0, 1, 1], [], []>} : vector<8x128xf32>, vector<128x128xf32>, vector<8x128xf32> -> vector<8x128xf32>
    %c0_14 = arith.constant 0 : index
    %c256 = arith.constant 256 : index
    %17 = vector.load %arg5[%c0_14, %c256] : memref<1x384xf32, #tpu.memory_space<vmem>>, vector<1x128xf32>
    %18 = vector.broadcast %17 : vector<1x128xf32> to vector<8x128xf32>
    %19 = arith.addf %16, %18 : vector<8x128xf32>
    %c0_15 = arith.constant 0 : index
    %c0_16 = arith.constant 0 : index
    %20 = vector.load %arg6[%c0_15, %c0_16] : memref<8x128xf32, #tpu.memory_space<vmem>>, vector<8x128xf32>
    tpu.vector_store %arg6[%c0_15, %c0_16], %19 {strides = array<i32>} : memref<8x128xf32, #tpu.memory_space<vmem>>, vector<8x128xf32>,
    return
  }
  func.func @transform_0(%arg0: i32) -> (i32, i32) {
    %c0_i32 = arith.constant 0 : i32
    %c0_i32_0 = arith.constant 0 : i32
    return %arg0, %c0_i32 : i32, i32
  }
  func.func @transform_1(%arg0: i32) -> (i32, i32) {
    %c0_i32 = arith.constant 0 : i32
    %c0_i32_0 = arith.constant 0 : i32
    %c0_i32_1 = arith.constant 0 : i32
    return %c0_i32, %c0_i32_0 : i32, i32
  }
  func.func @transform_2(%arg0: i32) -> (i32, i32) {
    %c0_i32 = arith.constant 0 : i32
    %c0_i32_0 = arith.constant 0 : i32
    %c0_i32_1 = arith.constant 0 : i32
    return %c0_i32, %c0_i32_0 : i32, i32
  }
  func.func @transform_3(%arg0: i32) -> (i32, i32) {
    %c0_i32 = arith.constant 0 : i32
    %c0_i32_0 = arith.constant 0 : i32
    %c0_i32_1 = arith.constant 0 : i32
    return %c0_i32, %c0_i32_0 : i32, i32
  }
  func.func @transform_4(%arg0: i32) -> (i32, i32) {
    %c0_i32 = arith.constant 0 : i32
    %c0_i32_0 = arith.constant 0 : i32
    %c0_i32_1 = arith.constant 0 : i32
    return %c0_i32, %c0_i32_0 : i32, i32
  }
  func.func @transform_5(%arg0: i32) -> (i32, i32) {
    %c0_i32 = arith.constant 0 : i32
    %c0_i32_0 = arith.constant 0 : i32
    return %arg0, %c0_i32 : i32, i32
  }
}

</mosaic_0001>

<bundles_post_ra>
// kernel: tpu_custom_call.1
= control target key start
LH: loop header
LB: loop body
LE: loop exit
PB: predicated region body
PF: predicated region fallthrough
CT: control target
= control target key end

     0   :  { %10 = vsyncpa [#allocation3], 0  ;;  %s803_s0 = inlined_call_operand.hbm [shape: f32[8,24], index: 0, kind: input, shape index: {}]   ;;  %s804_s1 = inlined_call_operand.hbm [shape: f32[24,128], index: 1, kind: input, shape index: {}]   ;;  %s805_s2 = inlined_call_operand.hbm [shape: f32[128,128], index: 2, kind: input, shape index: {}]   ;;  %s806_s3 = inlined_call_operand.hbm [shape: f32[128,128], index: 3, kind: input, shape index: {}]   ;;  %s807_s4 = inlined_call_operand.vmem [shape: f32[1,384], index: 4, kind: input, shape index: {}]   ;;  %s808_s5 = inlined_call_operand.hbm [shape: f32[8,128], index: 5, kind: output, shape index: {}]  }
   0x1   :  { %11 = vsyncpa [#allocation6], 0 }
   0x2   :  { %12 = vsyncpa [#allocation9], 0 }
   0x3   :  { %13 = vsyncpa [#allocation4], 0  ;;  %s665_s18 = smov [#allocation5]   ;;  %s547_s22 = scalar_lea.hbm %s804_s1, 384 }
   0x4   :  { %s29_s19 = sshll.u32 %s665_s18, 4  ;;  %p548_p0 = scmp.ne.s32.totalorder %s804_s1, %s547_s22  ;;  %s30_s19 = int_to_ptr.vmem [resolvable:$true] %s29_s19 }
   0x5   :  { %p551_p1 = scmp.lt.u32.totalorder %s547_s22, %s804_s1 }
   0x7   :  { %p553_p2 = pnand %p551_p1, %p548_p0 }
   0x9   :  { %556 = shalt.err (!%p553_p2)
}
   0xa   :  { %s557_s27 = scalar_lea.vmem %s30_s19, 384  ;;  %p562_p4 = scmp.lt.s32.totalorder %s30_s19, %s30_s19 }
   0xb   :  { %p558_p3 = scmp.ne.s32.totalorder %s30_s19, %s557_s27  ;;  %p563_p5 = scmp.lt.s32.totalorder %s557_s27, %s557_s27 }
   0xd   :  { %p564_p6 = por %p563_p5, %p562_p4 }
   0xf   :  { %p565_p7 = pnand %p564_p6, %p558_p3 }
  0x11   :  { %568 = shalt.err (!%p565_p7)
}
  0x12   :  { %s666_s28 = smov 128   ;;  %s667_s29 = smov 8  }
  0x13   :  { %35 = dma.hbm_to_vmem [thread:$0]  %s804_s1, 384, %s30_s19, [#allocation6], %s666_s28, %s666_s28, %s667_s29  }
  0x14   :  { %s668_s7 = smov [#allocation2]   ;;  %s669_s9 = smov [#allocation7]  }
  0x15   :  { %s20_s8 = sshll.u32 %s668_s7, 4  ;;  %s41_s10 = sshll.u32 %s669_s9, 4  ;;  %s21_s8 = int_to_ptr.vmem [resolvable:$true] %s20_s8  ;;  %s42_s10 = int_to_ptr.vmem [resolvable:$true] %s41_s10 }
  0x16   :  { %s569_s13 = scalar_lea.hbm %s803_s0, 128 }
  0x17   :  { %p570_p8 = scmp.ne.s32.totalorder %s803_s0, %s569_s13  ;;  %p573_p9 = scmp.lt.u32.totalorder %s569_s13, %s803_s0 }
  0x19   :  { %p575_p10 = pnand %p573_p9, %p570_p8 }
  0x1b   :  { %578 = shalt.err (!%p575_p10)
}
  0x1c   :  { %s579_s1 = scalar_lea.vmem %s21_s8, 128  ;;  %p584_p12 = scmp.lt.s32.totalorder %s21_s8, %s21_s8 }
  0x1d   :  { %p580_p11 = scmp.ne.s32.totalorder %s21_s8, %s579_s1  ;;  %p585_p13 = scmp.lt.s32.totalorder %s579_s1, %s579_s1 }
  0x1f   :  { %p586_p0 = por %p585_p13, %p584_p12 }
  0x21   :  { %p587_p1 = pnand %p586_p0, %p580_p11 }
  0x23   :  { %590 = shalt.err (!%p587_p1)
}
  0x24   :  { %23 = dma.hbm_to_vmem [thread:$0]  %s803_s0, 128, %s21_s8, [#allocation3]  }
  0x25   :  { %s591_s22 = scalar_lea.hbm %s805_s2, 2048 }
  0x26   :  { %p592_p2 = scmp.ne.s32.totalorder %s805_s2, %s591_s22  ;;  %p595_p3 = scmp.lt.u32.totalorder %s591_s22, %s805_s2 }
  0x28   :  { %p597_p4 = pnand %p595_p3, %p592_p2 }
  0x2a   :  { %600 = shalt.err (!%p597_p4)
}
  0x2b   :  { %s601_s27 = scalar_lea.vmem %s42_s10, 2048  ;;  %p606_p6 = scmp.lt.s32.totalorder %s42_s10, %s42_s10 }
  0x2c   :  { %p602_p5 = scmp.ne.s32.totalorder %s42_s10, %s601_s27  ;;  %p607_p7 = scmp.lt.s32.totalorder %s601_s27, %s601_s27 }
  0x2e   :  { %p608_p8 = por %p607_p7, %p606_p6 }
  0x30   :  { %p609_p9 = pnand %p608_p8, %p602_p5 }
  0x32   :  { %612 = shalt.err (!%p609_p9)
}
  0x33   :  { %47 = dma.hbm_to_vmem [thread:$0]  %s805_s2, 2048, %s42_s10, [#allocation6], %s666_s28, %s666_s28, %s667_s29  }
  0x34   :  { %s670_s6 = smov [#allocation8]   ;;  %s613_s11 = scalar_lea.hbm %s806_s3, 2048 }
  0x35   :  { %s53_s7 = sshll.u32 %s670_s6, 4  ;;  %p614_p10 = scmp.ne.s32.totalorder %s806_s3, %s613_s11  ;;  %s54_s7 = int_to_ptr.vmem [resolvable:$true] %s53_s7 }
  0x36   :  { %p617_p11 = scmp.lt.u32.totalorder %s613_s11, %s806_s3 }
  0x38   :  { %p619_p12 = pnand %p617_p11, %p614_p10 }
  0x3a   :  { %622 = shalt.err (!%p619_p12)
}
  0x3b   :  { %s623_s16 = scalar_lea.vmem %s54_s7, 2048  ;;  %p628_p0 = scmp.lt.s32.totalorder %s54_s7, %s54_s7 }
  0x3c   :  { %p624_p13 = scmp.ne.s32.totalorder %s54_s7, %s623_s16  ;;  %p629_p1 = scmp.lt.s32.totalorder %s623_s16, %s623_s16 }
  0x3e   :  { %p630_p2 = por %p629_p1, %p628_p0 }
  0x40   :  { %p631_p3 = pnand %p630_p2, %p624_p13 }
  0x42   :  { %634 = shalt.err (!%p631_p3)
}
  0x43   :  { %59 = dma.hbm_to_vmem [thread:$0]  %s806_s3, 2048, %s54_s7, [#allocation9], %s666_s28, %s666_s28, %s667_s29  }
  0x44   :  { %657 = dma.done.wait [#allocation3], 128  }
  0x45   :  { %658 = vsyncadd [#allocation3], 4294967168 }
  0x46   :  { %659 = dma.done.wait [#allocation6], 2432  }
  0x47   :  { %660 = vsyncadd [#allocation6], 4294964864 }
  0x48   :  { %661 = dma.done.wait [#allocation9], 2048  }
  0x49   :  { %662 = vsyncadd [#allocation9], 4294965248  ;;  %v671_v0 = vmov 0.0|0.0   ;;  %vm672_vm0 = vmmov 0   ;;  %v673_v1 = vmov 0.0   ;;  %v74_v2 = vld [vmem:[#allocation5] sm:$0xff] }
  0x4a   :  { %486 = vmatprep.subr.bf16.mxu0 %v671_v0  ;;  %413 = vmatprep.mubr.msk.f32.mxu0 %vm672_vm0, %v673_v1  ;;  %v75_v3 = vld [vmem:[#allocation5 + $0x8] sm:$0xff]  ;;  %v77_v5 = vld [vmem:[#allocation7] sm:$0xff]  ;;  %v78_v6 = vld [vmem:[#allocation7 + $0x8] sm:$0xff]  ;;  %vm117_vm1 = vcmask 195584   ;;  %s674_s19 = smov [#allocation10]  }
  0x4b   :  { %489 = vmatprep.subr.bf16.mxu1 %v671_v0  ;;  %448 = vmatprep.mubr.msk.f32.mxu1 %vm672_vm0, %v673_v1  ;;  %v487_v4 = vpack.c.bf16 %v75_v3, %v74_v2  ;;  %v490_v7 = vpack.c.bf16 %v78_v6, %v77_v5  ;;  %v79_v8 = vld [vmem:[#allocation7 + $0x10] sm:$0xff]  ;;  %v80_v9 = vld [vmem:[#allocation7 + $0x18] sm:$0xff]  ;;  %v109_v12 = vld [vmem:[#allocation2] sm:$0xff]  ;;  %s354_s20 = sshll.u32 %s674_s19, 4  ;;  %s355_s20 = int_to_ptr.vmem [resolvable:$true] %s354_s20 }
  0x4c   :  { %v76_v10 = vld [vmem:[#allocation5 + $0x10] sm:$0xff]  ;;  %v493_v11 = vpack.c.bf16 %v80_v9, %v79_v8  ;;  %v81_v13 = vld [vmem:[#allocation7 + $0x20] sm:$0xff]  ;;  %v82_v14 = vld [vmem:[#allocation7 + $0x28] sm:$0xff]  ;;  %s635_s21 = scalar_lea.vmem %s355_s20, 128  ;;  %p640_p5 = scmp.lt.s32.totalorder %s355_s20, %s355_s20 }
  0x4d   :  { %488 = vmatpush3.bf16.msra.mxu0 %v487_v4  ;;  %491 = vmatpush3.bf16.msra.mxu1 %v490_v7  ;;  %v496_v15 = vpack.c.bf16 %v82_v14, %v81_v13  ;;  %v83_v16 = vld [vmem:[#allocation7 + $0x30] sm:$0xff]  ;;  %v84_v17 = vld [vmem:[#allocation7 + $0x38] sm:$0xff]  ;;  %v85_v19 = vld [vmem:[#allocation7 + $0x40] sm:$0xff]  ;;  %p636_p4 = scmp.ne.s32.totalorder %s355_s20, %s635_s21  ;;  %p641_p6 = scmp.lt.s32.totalorder %s635_s21, %s635_s21 }
  0x4e   :  { %411 = vmatprep.subr.mxu0 %v673_v1  ;;  %492 = vmatprep.subr.bf16.mxu1 %v671_v0  ;;  %v499_v18 = vpack.c.bf16 %v84_v17, %v83_v16  ;;  %v86_v20 = vld [vmem:[#allocation7 + $0x48] sm:$0xff]  ;;  %v87_v22 = vld [vmem:[#allocation7 + $0x50] sm:$0xff]  ;;  %v88_v23 = vld [vmem:[#allocation7 + $0x58] sm:$0xff] }
  0x4f   :  { %v502_v21 = vpack.c.bf16 %v86_v20, %v85_v19  ;;  %v505_v24 = vpack.c.bf16 %v88_v23, %v87_v22  ;;  %v89_v25 = vld [vmem:[#allocation7 + $0x60] sm:$0xff]  ;;  %v90_v26 = vld [vmem:[#allocation7 + $0x68] sm:$0xff]  ;;  %v91_v28 = vld [vmem:[#allocation7 + $0x70] sm:$0xff]  ;;  %p642_p7 = por %p641_p6, %p640_p5 }
  0x50   :  { %v508_v27 = vpack.c.bf16 %v90_v26, %v89_v25  ;;  %v92_v29 = vld [vmem:[#allocation7 + $0x78] sm:$0xff]  ;;  %v93_v31 = vld [vmem:[#allocation8] sm:$0xff]  ;;  %v94_v32 = vld [vmem:[#allocation8 + $0x8] sm:$0xff] }
  0x51   :  { %412 = vmatpush3.msra.mxu0 %v76_v10  ;;  %494 = vmatpush3.bf16.msra.mxu1 %v493_v11  ;;  %v511_v30 = vpack.c.bf16 %v92_v29, %v91_v28  ;;  %v95_v33 = vld [vmem:[#allocation8 + $0x10] sm:$0xff]  ;;  %v514_v34 = vpack.c.bf16 %v94_v32, %v93_v31  ;;  %v96_v35 = vld [vmem:[#allocation8 + $0x18] sm:$0xff]  ;;  %v97_v37 = vld [vmem:[#allocation8 + $0x20] sm:$0xff]  ;;  %p643_p8 = pnand %p642_p7, %p636_p4 }
  0x52   :  { %414 = vmatmul.mubr.msk.f32.vlgmr.msra.gmra.mrb[0].mxu0 %vm117_vm1, %v109_v12  ;;  %495 = vmatprep.subr.bf16.mxu1 %v671_v0  ;;  %v517_v36 = vpack.c.bf16 %v96_v35, %v95_v33  ;;  %v98_v38 = vld [vmem:[#allocation8 + $0x28] sm:$0xff]  ;;  %v99_v40 = vld [vmem:[#allocation8 + $0x30] sm:$0xff]  ;;  %v100_v41 = vld [vmem:[#allocation8 + $0x38] sm:$0xff] }
  0x53   :  { %513 = vmatprep.subr.bf16.mxu0 %v671_v0  ;;  %483 = vmatprep.mubr.msk.f32.mxu0 %vm672_vm0, %v673_v1  ;;  %v520_v39 = vpack.c.bf16 %v98_v38, %v97_v37  ;;  %v523_v42 = vpack.c.bf16 %v100_v41, %v99_v40  ;;  %v101_v43 = vld [vmem:[#allocation8 + $0x40] sm:$0xff]  ;;  %v102_v44 = vld [vmem:[#allocation8 + $0x48] sm:$0xff]  ;;  %v103_v46 = vld [vmem:[#allocation8 + $0x50] sm:$0xff] }
  0x54   :  { %515 = vmatpush3.bf16.msra.mxu0 %v514_v34  ;;  %v526_v45 = vpack.c.bf16 %v102_v44, %v101_v43  ;;  %v104_v47 = vld [vmem:[#allocation8 + $0x58] sm:$0xff]  ;;  %v105_v49 = vld [vmem:[#allocation8 + $0x60] sm:$0xff]  ;;  %v106_v50 = vld [vmem:[#allocation8 + $0x68] sm:$0xff] }
  0x55   :  { %497 = vmatpush3.bf16.msra.mxu1 %v496_v15  ;;  %516 = vmatprep.subr.bf16.mxu0 %v671_v0  ;;  %v529_v48 = vpack.c.bf16 %v104_v47, %v103_v46  ;;  %v532_v51 = vpack.c.bf16 %v106_v50, %v105_v49  ;;  %v365_v52 = vld [vmem:[%s807_s4] ss:$0 sm:$0xff]  ;;  %v107_v57 = vld [vmem:[#allocation8 + $0x70] sm:$0xff]  ;;  %v108_v58 = vld [vmem:[#allocation8 + $0x78] sm:$0xff] }
  0x56   :  { %498 = vmatprep.subr.bf16.mxu1 %v671_v0  ;;  %v535_v59 = vpack.c.bf16 %v108_v58, %v107_v57  ;;  %v367_v60 = vld [vmem:[%s807_s4 + $0x1] ss:$0 sm:$0xff]  ;;  %v368_v1 = vld [vmem:[%s807_s4 + $0x2] ss:$0 sm:$0xff] }
  0x58   :  { %518 = vmatpush3.bf16.msra.mxu0 %v517_v36 }
  0x59   :  { %500 = vmatpush3.bf16.msra.mxu1 %v499_v18  ;;  %519 = vmatprep.subr.bf16.mxu0 %v671_v0 }
  0x5a   :  { %501 = vmatprep.subr.bf16.mxu1 %v671_v0 }
  0x5c   :  { %521 = vmatpush3.bf16.msra.mxu0 %v520_v39 }
  0x5d   :  { %503 = vmatpush3.bf16.msra.mxu1 %v502_v21  ;;  %522 = vmatprep.subr.bf16.mxu0 %v671_v0 }
  0x5e   :  { %504 = vmatprep.subr.bf16.mxu1 %v671_v0 }
  0x60   :  { %524 = vmatpush3.bf16.msra.mxu0 %v523_v42 }
  0x61   :  { %506 = vmatpush3.bf16.msra.mxu1 %v505_v24  ;;  %525 = vmatprep.subr.bf16.mxu0 %v671_v0 }
  0x62   :  { %507 = vmatprep.subr.bf16.mxu1 %v671_v0 }
  0x64   :  { %527 = vmatpush3.bf16.msra.mxu0 %v526_v45 }
  0x65   :  { %509 = vmatpush3.bf16.msra.mxu1 %v508_v27  ;;  %528 = vmatprep.subr.bf16.mxu0 %v671_v0 }
  0x66   :  { %510 = vmatprep.subr.bf16.mxu1 %v671_v0 }
  0x68   :  { %530 = vmatpush3.bf16.msra.mxu0 %v529_v48 }
  0x69   :  { %512 = vmatpush3.bf16.msra.mxu1 %v511_v30  ;;  %531 = vmatprep.subr.bf16.mxu0 %v671_v0 }
  0x6c   :  { %533 = vmatpush3.bf16.msra.mxu0 %v532_v51 }
  0x6d   :  { %534 = vmatprep.subr.bf16.mxu0 %v671_v0 }
  0x70   :  { %536 = vmatpush3.bf16.msra.mxu0 %v535_v59 }
 0x125   :  { %v187_v53 = vpop.f32.mrb[0].mxu0 }
 0x126   :  { %v188_v54 = vadd.f32 %v365_v52, %v187_v53  ;;  %v415_v55 = vpop.f32.mrb[1].mxu0 }
 0x128   :  { %v191_v56 = vmax.f32 %v188_v54, 0.0 }
 0x12a   :  { %449 = vmatmul.mubr.f32.vlgmr.msra.gmra.mrb[0].mxu1 %v191_v56 }
 0x1fd   :  { %v265_v61 = vpop.f32.mrb[0].mxu1 }
 0x1fe   :  { %v266_v62 = vadd.f32 %v367_v60, %v265_v61  ;;  %v450_v63 = vpop.f32.mrb[1].mxu1 }
 0x200   :  { %v269_v0 = vmax.f32 %v266_v62, 0.0 }
 0x202   :  { %484 = vmatmul.mubr.f32.vlgmr.msra.gmra.mrb[2].mxu0 %v269_v0 }
 0x2d5   :  { %v343_v2 = vpop.f32.mrb[2].mxu0 }
 0x2d6   :  { %v344_v3 = vadd.f32 %v368_v1, %v343_v2  ;;  %v485_v4 = vpop.f32.mrb[3].mxu0 }
 0x2d8   :  { %347 = vst [vmem:[#allocation10] sm:$0xff] %v344_v3 }
 0x2d9   :  { %646 = shalt.err (!%p643_p8)
}
 0x2da   :  { %s647_s24 = scalar_lea.hbm %s808_s5, 128 }
 0x2db   :  { %p648_p9 = scmp.ne.s32.totalorder %s808_s5, %s647_s24  ;;  %p651_p10 = scmp.lt.u32.totalorder %s647_s24, %s808_s5 }
 0x2dd   :  { %p653_p11 = pnand %p651_p10, %p648_p9 }
 0x2df   :  { %656 = shalt.err (!%p653_p11)
}
 0x2e0   :  { %357 = dma.vmem_to_hbm [thread:$0]  %s355_s20, 128, %s808_s5, [#allocation4]  }
 0x2e1   :  { %663 = dma.done.wait [#allocation4], 128  }
 0x2e2   :  { %664 = vsyncadd [#allocation4], 4294967168 }
 0x2e3   :  { %361 = vsyncpa [#allocation3], 1 }
 0x2e4   :  { %362 = vsyncpa [#allocation6], 1 }
 0x2e5   :  { %363 = vsyncpa [#allocation9], 1 }
 0x2e6   :  { %364 = vsyncpa [#allocation4], 1 }

// kernel: tpu_custom_call.1
= control target key start
LH: loop header
LB: loop body
LE: loop exit
PB: predicated region body
PF: predicated region fallthrough
CT: control target
= control target key end

     0   :  { %10 = vsyncpa [#allocation3], 0  ;;  %s803_s0 = inlined_call_operand.hbm [shape: f32[8,24], index: 0, kind: input, shape index: {}]   ;;  %s804_s1 = inlined_call_operand.hbm [shape: f32[24,128], index: 1, kind: input, shape index: {}]   ;;  %s805_s2 = inlined_call_operand.hbm [shape: f32[128,128], index: 2, kind: input, shape index: {}]   ;;  %s806_s3 = inlined_call_operand.hbm [shape: f32[128,128], index: 3, kind: input, shape index: {}]   ;;  %s807_s4 = inlined_call_operand.vmem [shape: f32[1,384], index: 4, kind: input, shape index: {}]   ;;  %s808_s5 = inlined_call_operand.hbm [shape: f32[8,128], index: 5, kind: output, shape index: {}]  }
   0x1   :  { %11 = vsyncpa [#allocation6], 0 }
   0x2   :  { %12 = vsyncpa [#allocation9], 0 }
   0x3   :  { %13 = vsyncpa [#allocation4], 0  ;;  %s665_s18 = smov [#allocation5]   ;;  %s547_s22 = scalar_lea.hbm %s804_s1, 384 }
   0x4   :  { %s29_s19 = sshll.u32 %s665_s18, 4  ;;  %p548_p0 = scmp.ne.s32.totalorder %s804_s1, %s547_s22  ;;  %s30_s19 = int_to_ptr.vmem [resolvable:$true] %s29_s19 }
   0x5   :  { %p551_p1 = scmp.lt.u32.totalorder %s547_s22, %s804_s1 }
   0x7   :  { %p553_p2 = pnand %p551_p1, %p548_p0 }
   0x9   :  { %556 = shalt.err (!%p553_p2)
}
   0xa   :  { %s557_s27 = scalar_lea.vmem %s30_s19, 384  ;;  %p562_p4 = scmp.lt.s32.totalorder %s30_s19, %s30_s19 }
   0xb   :  { %p558_p3 = scmp.ne.s32.totalorder %s30_s19, %s557_s27  ;;  %p563_p5 = scmp.lt.s32.totalorder %s557_s27, %s557_s27 }
   0xd   :  { %p564_p6 = por %p563_p5, %p562_p4 }
   0xf   :  { %p565_p7 = pnand %p564_p6, %p558_p3 }
  0x11   :  { %568 = shalt.err (!%p565_p7)
}
  0x12   :  { %s666_s28 = smov 128   ;;  %s667_s29 = smov 8  }
  0x13   :  { %35 = dma.hbm_to_vmem [thread:$0]  %s804_s1, 384, %s30_s19, [#allocation6], %s666_s28, %s666_s28, %s667_s29  }
  0x14   :  { %s668_s7 = smov [#allocation2]   ;;  %s669_s9 = smov [#allocation7]  }
  0x15   :  { %s20_s8 = sshll.u32 %s668_s7, 4  ;;  %s41_s10 = sshll.u32 %s669_s9, 4  ;;  %s21_s8 = int_to_ptr.vmem [resolvable:$true] %s20_s8  ;;  %s42_s10 = int_to_ptr.vmem [resolvable:$true] %s41_s10 }
  0x16   :  { %s569_s13 = scalar_lea.hbm %s803_s0, 128 }
  0x17   :  { %p570_p8 = scmp.ne.s32.totalorder %s803_s0, %s569_s13  ;;  %p573_p9 = scmp.lt.u32.totalorder %s569_s13, %s803_s0 }
  0x19   :  { %p575_p10 = pnand %p573_p9, %p570_p8 }
  0x1b   :  { %578 = shalt.err (!%p575_p10)
}
  0x1c   :  { %s579_s1 = scalar_lea.vmem %s21_s8, 128  ;;  %p584_p12 = scmp.lt.s32.totalorder %s21_s8, %s21_s8 }
  0x1d   :  { %p580_p11 = scmp.ne.s32.totalorder %s21_s8, %s579_s1  ;;  %p585_p13 = scmp.lt.s32.totalorder %s579_s1, %s579_s1 }
  0x1f   :  { %p586_p0 = por %p585_p13, %p584_p12 }
  0x21   :  { %p587_p1 = pnand %p586_p0, %p580_p11 }
  0x23   :  { %590 = shalt.err (!%p587_p1)
}
  0x24   :  { %23 = dma.hbm_to_vmem [thread:$0]  %s803_s0, 128, %s21_s8, [#allocation3]  }
  0x25   :  { %s591_s22 = scalar_lea.hbm %s805_s2, 2048 }
  0x26   :  { %p592_p2 = scmp.ne.s32.totalorder %s805_s2, %s591_s22  ;;  %p595_p3 = scmp.lt.u32.totalorder %s591_s22, %s805_s2 }
  0x28   :  { %p597_p4 = pnand %p595_p3, %p592_p2 }
  0x2a   :  { %600 = shalt.err (!%p597_p4)
}
  0x2b   :  { %s601_s27 = scalar_lea.vmem %s42_s10, 2048  ;;  %p606_p6 = scmp.lt.s32.totalorder %s42_s10, %s42_s10 }
  0x2c   :  { %p602_p5 = scmp.ne.s32.totalorder %s42_s10, %s601_s27  ;;  %p607_p7 = scmp.lt.s32.totalorder %s601_s27, %s601_s27 }
  0x2e   :  { %p608_p8 = por %p607_p7, %p606_p6 }
  0x30   :  { %p609_p9 = pnand %p608_p8, %p602_p5 }
  0x32   :  { %612 = shalt.err (!%p609_p9)
}
  0x33   :  { %47 = dma.hbm_to_vmem [thread:$0]  %s805_s2, 2048, %s42_s10, [#allocation6], %s666_s28, %s666_s28, %s667_s29  }
  0x34   :  { %s670_s6 = smov [#allocation8]   ;;  %s613_s11 = scalar_lea.hbm %s806_s3, 2048 }
  0x35   :  { %s53_s7 = sshll.u32 %s670_s6, 4  ;;  %p614_p10 = scmp.ne.s32.totalorder %s806_s3, %s613_s11  ;;  %s54_s7 = int_to_ptr.vmem [resolvable:$true] %s53_s7 }
  0x36   :  { %p617_p11 = scmp.lt.u32.totalorder %s613_s11, %s806_s3 }
  0x38   :  { %p619_p12 = pnand %p617_p11, %p614_p10 }
  0x3a   :  { %622 = shalt.err (!%p619_p12)
}
  0x3b   :  { %s623_s16 = scalar_lea.vmem %s54_s7, 2048  ;;  %p628_p0 = scmp.lt.s32.totalorder %s54_s7, %s54_s7 }
  0x3c   :  { %p624_p13 = scmp.ne.s32.totalorder %s54_s7, %s623_s16  ;;  %p629_p1 = scmp.lt.s32.totalorder %s623_s16, %s623_s16 }
  0x3e   :  { %p630_p2 = por %p629_p1, %p628_p0 }
  0x40   :  { %p631_p3 = pnand %p630_p2, %p624_p13 }
  0x42   :  { %634 = shalt.err (!%p631_p3)
}
  0x43   :  { %59 = dma.hbm_to_vmem [thread:$0]  %s806_s3, 2048, %s54_s7, [#allocation9], %s666_s28, %s666_s28, %s667_s29  }
  0x44   :  { %657 = dma.done.wait [#allocation3], 128  }
  0x45   :  { %658 = vsyncadd [#allocation3], 4294967168 }
  0x46   :  { %659 = dma.done.wait [#allocation6], 2432  }
  0x47   :  { %660 = vsyncadd [#allocation6], 4294964864 }
  0x48   :  { %661 = dma.done.wait [#allocation9], 2048  }
  0x49   :  { %662 = vsyncadd [#allocation9], 4294965248  ;;  %v671_v0 = vmov 0.0|0.0   ;;  %vm672_vm0 = vmmov 0   ;;  %v673_v1 = vmov 0.0   ;;  %v74_v2 = vld [vmem:[#allocation5] sm:$0xff] }
  0x4a   :  { %486 = vmatprep.subr.bf16.mxu0 %v671_v0  ;;  %413 = vmatprep.mubr.msk.f32.mxu0 %vm672_vm0, %v673_v1  ;;  %v75_v3 = vld [vmem:[#allocation5 + $0x8] sm:$0xff]  ;;  %v77_v5 = vld [vmem:[#allocation7] sm:$0xff]  ;;  %v78_v6 = vld [vmem:[#allocation7 + $0x8] sm:$0xff]  ;;  %vm117_vm1 = vcmask 195584   ;;  %s674_s19 = smov [#allocation10]  }
  0x4b   :  { %489 = vmatprep.subr.bf16.mxu1 %v671_v0  ;;  %448 = vmatprep.mubr.msk.f32.mxu1 %vm672_vm0, %v673_v1  ;;  %v487_v4 = vpack.c.bf16 %v75_v3, %v74_v2  ;;  %v490_v7 = vpack.c.bf16 %v78_v6, %v77_v5  ;;  %v79_v8 = vld [vmem:[#allocation7 + $0x10] sm:$0xff]  ;;  %v80_v9 = vld [vmem:[#allocation7 + $0x18] sm:$0xff]  ;;  %v109_v12 = vld [vmem:[#allocation2] sm:$0xff]  ;;  %s354_s20 = sshll.u32 %s674_s19, 4  ;;  %s355_s20 = int_to_ptr.vmem [resolvable:$true] %s354_s20 }
  0x4c   :  { %v76_v10 = vld [vmem:[#allocation5 + $0x10] sm:$0xff]  ;;  %v493_v11 = vpack.c.bf16 %v80_v9, %v79_v8  ;;  %v81_v13 = vld [vmem:[#allocation7 + $0x20] sm:$0xff]  ;;  %v82_v14 = vld [vmem:[#allocation7 + $0x28] sm:$0xff]  ;;  %s635_s21 = scalar_lea.vmem %s355_s20, 128  ;;  %p640_p5 = scmp.lt.s32.totalorder %s355_s20, %s355_s20 }
  0x4d   :  { %488 = vmatpush3.bf16.msra.mxu0 %v487_v4  ;;  %491 = vmatpush3.bf16.msra.mxu1 %v490_v7  ;;  %v496_v15 = vpack.c.bf16 %v82_v14, %v81_v13  ;;  %v83_v16 = vld [vmem:[#allocation7 + $0x30] sm:$0xff]  ;;  %v84_v17 = vld [vmem:[#allocation7 + $0x38] sm:$0xff]  ;;  %v85_v19 = vld [vmem:[#allocation7 + $0x40] sm:$0xff]  ;;  %p636_p4 = scmp.ne.s32.totalorder %s355_s20, %s635_s21  ;;  %p641_p6 = scmp.lt.s32.totalorder %s635_s21, %s635_s21 }
  0x4e   :  { %411 = vmatprep.subr.mxu0 %v673_v1  ;;  %492 = vmatprep.subr.bf16.mxu1 %v671_v0  ;;  %v499_v18 = vpack.c.bf16 %v84_v17, %v83_v16  ;;  %v86_v20 = vld [vmem:[#allocation7 + $0x48] sm:$0xff]  ;;  %v87_v22 = vld [vmem:[#allocation7 + $0x50] sm:$0xff]  ;;  %v88_v23 = vld [vmem:[#allocation7 + $0x58] sm:$0xff] }
  0x4f   :  { %v502_v21 = vpack.c.bf16 %v86_v20, %v85_v19  ;;  %v505_v24 = vpack.c.bf16 %v88_v23, %v87_v22  ;;  %v89_v25 = vld [vmem:[#allocation7 + $0x60] sm:$0xff]  ;;  %v90_v26 = vld [vmem:[#allocation7 + $0x68] sm:$0xff]  ;;  %v91_v28 = vld [vmem:[#allocation7 + $0x70] sm:$0xff]  ;;  %p642_p7 = por %p641_p6, %p640_p5 }
  0x50   :  { %v508_v27 = vpack.c.bf16 %v90_v26, %v89_v25  ;;  %v92_v29 = vld [vmem:[#allocation7 + $0x78] sm:$0xff]  ;;  %v93_v31 = vld [vmem:[#allocation8] sm:$0xff]  ;;  %v94_v32 = vld [vmem:[#allocation8 + $0x8] sm:$0xff] }
  0x51   :  { %412 = vmatpush3.msra.mxu0 %v76_v10  ;;  %494 = vmatpush3.bf16.msra.mxu1 %v493_v11  ;;  %v511_v30 = vpack.c.bf16 %v92_v29, %v91_v28  ;;  %v95_v33 = vld [vmem:[#allocation8 + $0x10] sm:$0xff]  ;;  %v514_v34 = vpack.c.bf16 %v94_v32, %v93_v31  ;;  %v96_v35 = vld [vmem:[#allocation8 + $0x18] sm:$0xff]  ;;  %v97_v37 = vld [vmem:[#allocation8 + $0x20] sm:$0xff]  ;;  %p643_p8 = pnand %p642_p7, %p636_p4 }
  0x52   :  { %414 = vmatmul.mubr.msk.f32.vlgmr.msra.gmra.mrb[0].mxu0 %vm117_vm1, %v109_v12  ;;  %495 = vmatprep.subr.bf16.mxu1 %v671_v0  ;;  %v517_v36 = vpack.c.bf16 %v96_v35, %v95_v33  ;;  %v98_v38 = vld [vmem:[#allocation8 + $0x28] sm:$0xff]  ;;  %v99_v40 = vld [vmem:[#allocation8 + $0x30] sm:$0xff]  ;;  %v100_v41 = vld [vmem:[#allocation8 + $0x38] sm:$0xff] }
  0x53   :  { %513 = vmatprep.subr.bf16.mxu0 %v671_v0  ;;  %483 = vmatprep.mubr.msk.f32.mxu0 %vm672_vm0, %v673_v1  ;;  %v520_v39 = vpack.c.bf16 %v98_v38, %v97_v37  ;;  %v523_v42 = vpack.c.bf16 %v100_v41, %v99_v40  ;;  %v101_v43 = vld [vmem:[#allocation8 + $0x40] sm:$0xff]  ;;  %v102_v44 = vld [vmem:[#allocation8 + $0x48] sm:$0xff]  ;;  %v103_v46 = vld [vmem:[#allocation8 + $0x50] sm:$0xff] }
  0x54   :  { %515 = vmatpush3.bf16.msra.mxu0 %v514_v34  ;;  %v526_v45 = vpack.c.bf16 %v102_v44, %v101_v43  ;;  %v104_v47 = vld [vmem:[#allocation8 + $0x58] sm:$0xff]  ;;  %v105_v49 = vld [vmem:[#allocation8 + $0x60] sm:$0xff]  ;;  %v106_v50 = vld [vmem:[#allocation8 + $0x68] sm:$0xff] }
  0x55   :  { %497 = vmatpush3.bf16.msra.mxu1 %v496_v15  ;;  %516 = vmatprep.subr.bf16.mxu0 %v671_v0  ;;  %v529_v48 = vpack.c.bf16 %v104_v47, %v103_v46  ;;  %v532_v51 = vpack.c.bf16 %v106_v50, %v105_v49  ;;  %v365_v52 = vld [vmem:[%s807_s4] ss:$0 sm:$0xff]  ;;  %v107_v57 = vld [vmem:[#allocation8 + $0x70] sm:$0xff]  ;;  %v108_v58 = vld [vmem:[#allocation8 + $0x78] sm:$0xff] }
  0x56   :  { %498 = vmatprep.subr.bf16.mxu1 %v671_v0  ;;  %v535_v59 = vpack.c.bf16 %v108_v58, %v107_v57  ;;  %v367_v60 = vld [vmem:[%s807_s4 + $0x1] ss:$0 sm:$0xff]  ;;  %v368_v1 = vld [vmem:[%s807_s4 + $0x2] ss:$0 sm:$0xff] }
  0x58   :  { %518 = vmatpush3.bf16.msra.mxu0 %v517_v36 }
  0x59   :  { %500 = vmatpush3.bf16.msra.mxu1 %v499_v18  ;;  %519 = vmatprep.subr.bf16.mxu0 %v671_v0 }
  0x5a   :  { %501 = vmatprep.subr.bf16.mxu1 %v671_v0 }
  0x5c   :  { %521 = vmatpush3.bf16.msra.mxu0 %v520_v39 }
  0x5d   :  { %503 = vmatpush3.bf16.msra.mxu1 %v502_v21  ;;  %522 = vmatprep.subr.bf16.mxu0 %v671_v0 }
  0x5e   :  { %504 = vmatprep.subr.bf16.mxu1 %v671_v0 }
  0x60   :  { %524 = vmatpush3.bf16.msra.mxu0 %v523_v42 }
  0x61   :  { %506 = vmatpush3.bf16.msra.mxu1 %v505_v24  ;;  %525 = vmatprep.subr.bf16.mxu0 %v671_v0 }
  0x62   :  { %507 = vmatprep.subr.bf16.mxu1 %v671_v0 }
  0x64   :  { %527 = vmatpush3.bf16.msra.mxu0 %v526_v45 }
  0x65   :  { %509 = vmatpush3.bf16.msra.mxu1 %v508_v27  ;;  %528 = vmatprep.subr.bf16.mxu0 %v671_v0 }
  0x66   :  { %510 = vmatprep.subr.bf16.mxu1 %v671_v0 }
  0x68   :  { %530 = vmatpush3.bf16.msra.mxu0 %v529_v48 }
  0x69   :  { %512 = vmatpush3.bf16.msra.mxu1 %v511_v30  ;;  %531 = vmatprep.subr.bf16.mxu0 %v671_v0 }
  0x6c   :  { %533 = vmatpush3.bf16.msra.mxu0 %v532_v51 }
  0x6d   :  { %534 = vmatprep.subr.bf16.mxu0 %v671_v0 }
  0x70   :  { %536 = vmatpush3.bf16.msra.mxu0 %v535_v59 }
 0x125   :  { %v187_v53 = vpop.f32.mrb[0].mxu0 }
 0x126   :  { %v188_v54 = vadd.f32 %v365_v52, %v187_v53  ;;  %v415_v55 = vpop.f32.mrb[1].mxu0 }
 0x128   :  { %v191_v56 = vmax.f32 %v188_v54, 0.0 }
 0x12a   :  { %449 = vmatmul.mubr.f32.vlgmr.msra.gmra.mrb[0].mxu1 %v191_v56 }
 0x1fd   :  { %v265_v61 = vpop.f32.mrb[0].mxu1 }
 0x1fe   :  { %v266_v62 = vadd.f32 %v367_v60, %v265_v61  ;;  %v450_v63 = vpop.f32.mrb[1].mxu1 }
 0x200   :  { %v269_v0 = vmax.f32 %v266_v62, 0.0 }
 0x202   :  { %484 = vmatmul.mubr.f32.vlgmr.msra.gmra.mrb[2].mxu0 %v269_v0 }
 0x2d5   :  { %v343_v2 = vpop.f32.mrb[2].mxu0 }
 0x2d6   :  { %v344_v3 = vadd.f32 %v368_v1, %v343_v2  ;;  %v485_v4 = vpop.f32.mrb[3].mxu0 }
 0x2d8   :  { %347 = vst [vmem:[#allocation10] sm:$0xff] %v344_v3 }
 0x2d9   :  { %646 = shalt.err (!%p643_p8)
}
 0x2da   :  { %s647_s24 = scalar_lea.hbm %s808_s5, 128 }
 0x2db   :  { %p648_p9 = scmp.ne.s32.totalorder %s808_s5, %s647_s24  ;;  %p651_p10 = scmp.lt.u32.totalorder %s647_s24, %s808_s5 }
 0x2dd   :  { %p653_p11 = pnand %p651_p10, %p648_p9 }
 0x2df   :  { %656 = shalt.err (!%p653_p11)
}
 0x2e0   :  { %357 = dma.vmem_to_hbm [thread:$0]  %s355_s20, 128, %s808_s5, [#allocation4]  }
 0x2e1   :  { %663 = dma.done.wait [#allocation4], 128  }
 0x2e2   :  { %664 = vsyncadd [#allocation4], 4294967168 }
 0x2e3   :  { %361 = vsyncpa [#allocation3], 1 }
 0x2e4   :  { %362 = vsyncpa [#allocation6], 1 }
 0x2e5   :  { %363 = vsyncpa [#allocation9], 1 }
 0x2e6   :  { %364 = vsyncpa [#allocation4], 1 }

</bundles_post_ra>
